<compile_context>
chip_gen: v7x
topology: tpu7x:2x2x1
jax: 0.10.0
libtpu: 0.0.40
codegen_flags: <defaults>
</compile_context>

<pallas_src>
import functools
import math

import jax
import jax.numpy as jnp
from jax.experimental import pallas as pl
from jax.experimental.pallas import tpu as pltpu

NEGATIVE_SLOPE = 1.0
IN_FEATURES = 3
OUT_FEATURES = 8

_TM_MAX = 131072        # target rows per grid step when M is large
_TM_MIN_SPLIT = 16384   # don't split into multiple blocks below this size


def _round_up(n, mult):
    return ((n + mult - 1) // mult) * mult


def _xla_forward(x, w, negative_slope):
    v1 = jnp.einsum("...k,ok->...o", x, w)
    return jnp.where(v1 > 0, v1, -negative_slope * v1)


def _contract_and_act(x, w, negative_slope):
    """x: (3, tm) lane-dense, w: (8, 3) -> (8, tm). VPU-only 3x8 contraction."""
    v = w[:, 0:1] * x[0:1, :]
    for k in range(1, IN_FEATURES):
        v = v + w[:, k:k + 1] * x[k:k + 1, :]
    # Fused activation: where(v > 0, v, -slope * v)  (slope negated, per module)
    return jnp.where(v > 0, v, (-negative_slope) * v)


def _interleaved_kernel(x_ref, w_ref, o_ref, *, negative_slope):
    # x_ref: (3, tm), w_ref: (8, 3), o_ref: (tm//16, 128)
    v = _contract_and_act(x_ref[...], w_ref[...], negative_slope)      # (8, tm)
    tm = v.shape[-1]
    # Re-interleave to the channels-last row-major flat layout:
    #   o[j, c*8+o'] = v[o', j*16 + c]  ==  transpose(v).reshape(tm//16, 128)
    # so the wrapper's reshape to (..., 8) is metadata-only (no extra HBM pass).
    o_ref[...] = jnp.transpose(v).reshape(tm // 16, 128).astype(o_ref.dtype)


def _channels_first_kernel(x_ref, w_ref, o_ref, *, negative_slope):
    # Fallback kernel: x_ref (3, tm) -> o_ref (8, tm), lane-dense stores.
    o_ref[...] = _contract_and_act(
        x_ref[...], w_ref[...], negative_slope).astype(o_ref.dtype)


def _pick_tile(m, tm_override):
    """Pick rows-per-step tm, grid size and an explicit VMEM limit."""
    if tm_override is not None:
        tm = min(_round_up(tm_override, 128), _round_up(m, 128))
    elif m <= 2 * _TM_MIN_SPLIT:
        tm = _round_up(m, 128)                       # single block
    else:
        # >= 2 balanced blocks (v7x megacore / pipeline overlap), even count,
        # each step ~<= _TM_MAX rows (~5.6 MiB of HBM traffic per step).
        n_steps = max(2, pl.cdiv(m, _TM_MAX))
        if n_steps % 2:
            n_steps += 1
        tm = _round_up(pl.cdiv(m, n_steps), 128)
    grid = pl.cdiv(m, tm)
    # Double-buffered VMEM: input (3->8, tm) + output (8*tm elems), f32 each.
    block_bytes = (8 * tm + 8 * tm) * 4
    vmem_limit = int(min(96 << 20, max(32 << 20, 2 * block_bytes + (8 << 20))))
    return tm, grid, vmem_limit


def _call_interleaved(x_t, w, negative_slope, m, tm, grid, vmem_limit):
    kernel = functools.partial(_interleaved_kernel,
                               negative_slope=float(negative_slope))
    return pl.pallas_call(
        kernel,
        out_shape=jax.ShapeDtypeStruct((m // 16, 128), jnp.float32),
        grid_spec=pltpu.PrefetchScalarGridSpec(
            num_scalar_prefetch=0,
            grid=(grid,),
            in_specs=[
                pl.BlockSpec((IN_FEATURES, tm), lambda i: (0, i)),
                pl.BlockSpec((OUT_FEATURES, IN_FEATURES), lambda i: (0, 0)),
            ],
            out_specs=pl.BlockSpec((tm // 16, 128), lambda i: (i, 0)),
        ),
        compiler_params=pltpu.CompilerParams(
            dimension_semantics=("parallel",),
            vmem_limit_bytes=vmem_limit,
        ),
    )(x_t, w)


def _call_channels_first(x_t, w, negative_slope, m, tm, grid, vmem_limit):
    kernel = functools.partial(_channels_first_kernel,
                               negative_slope=float(negative_slope))
    return pl.pallas_call(
        kernel,
        out_shape=jax.ShapeDtypeStruct((OUT_FEATURES, m), jnp.float32),
        grid_spec=pltpu.PrefetchScalarGridSpec(
            num_scalar_prefetch=0,
            grid=(grid,),
            in_specs=[
                pl.BlockSpec((IN_FEATURES, tm), lambda i: (0, i)),
                pl.BlockSpec((OUT_FEATURES, IN_FEATURES), lambda i: (0, 0)),
            ],
            out_specs=pl.BlockSpec((OUT_FEATURES, tm), lambda i: (0, i)),
        ),
        compiler_params=pltpu.CompilerParams(
            dimension_semantics=("parallel",),
            vmem_limit_bytes=vmem_limit,
        ),
    )(x_t, w)


_INTERLEAVED_SUPPORTED = None  # probed once per process


def _interleaved_supported(w, negative_slope, tm, vmem_limit):
    """Probe whether Mosaic lowers the in-kernel transpose+reshape (once)."""
    global _INTERLEAVED_SUPPORTED
    if _INTERLEAVED_SUPPORTED is None:
        try:
            x_probe = jnp.zeros((IN_FEATURES, tm), jnp.float32)
            out = _call_interleaved(x_probe, w, negative_slope,
                                    tm, tm, 1, vmem_limit)
            jax.block_until_ready(out)
            _INTERLEAVED_SUPPORTED = True
        except Exception:
            _INTERLEAVED_SUPPORTED = False
    return _INTERLEAVED_SUPPORTED


def linear_leaky(x, w, negative_slope=NEGATIVE_SLOPE, *, tm=None,
                 min_rows_for_pallas=131072):
    """x: (..., 3) float32, w: (8, 3) float32 -> (..., 8) float32."""
    orig_shape = x.shape
    assert orig_shape[-1] == IN_FEATURES
    assert w.shape == (OUT_FEATURES, IN_FEATURES)
    lead = orig_shape[:-1]
    m = math.prod(lead) if lead else 1

    # Tiny / zero-sized inputs: launch cost + the (M,3)->(3,M) layout pass
    # dominate; use the single-pass fused XLA path.
    if m == 0 or m < min_rows_for_pallas:
        return _xla_forward(x, w, negative_slope)

    # Channels-first view so the long M axis sits on the 128-lane dimension.
    x_t = jnp.transpose(x.reshape(m, IN_FEATURES))           # (3, M)

    tm_eff, grid, vmem_limit = _pick_tile(m, tm)

    if m % 16 == 0 and _interleaved_supported(w, negative_slope,
                                              tm_eff, vmem_limit):
        out2d = _call_interleaved(x_t, w, negative_slope,
                                  m, tm_eff, grid, vmem_limit)   # (m//16, 128)
        # Pure metadata reshape: (m//16, 128) is row-major (m, 8).
        return out2d.reshape(*lead, OUT_FEATURES)

    # Fallback: channels-first output + wrapper transpose (always lowers).
    out_t = _call_channels_first(x_t, w, negative_slope,
                                 m, tm_eff, grid, vmem_limit)    # (8, m)
    return jnp.transpose(out_t).reshape(*lead, OUT_FEATURES)


def reference(x, w, negative_slope=NEGATIVE_SLOPE):
    return _xla_forward(x, w, negative_slope)


if __name__ == "__main__":
    key = jax.random.PRNGKey(0)
    kx1, kx2, kx3, kw = jax.random.split(key, 4)

    # PyTorch Linear default-style init, layout (out_features, in_features).
    bound = 1.0 / math.sqrt(IN_FEATURES)
    w = jax.random.uniform(kw, (OUT_FEATURES, IN_FEATURES), jnp.float32,
                           minval=-bound, maxval=bound)

    # Case 1: small channels-last input (Linear acts on the last dim = 3).
    # min_rows_for_pallas=0 forces the Pallas path at this small demo size.
    x1 = jax.random.normal(kx1, (2, 16, 16, IN_FEATURES), dtype=jnp.float32)
    out1 = jax.block_until_ready(
        linear_leaky(x1, w, NEGATIVE_SLOPE, min_rows_for_pallas=0))
    assert out1.shape == (2, 16, 16, OUT_FEATURES)
    assert jnp.allclose(out1, reference(x1, w, NEGATIVE_SLOPE),
                        atol=1e-5, rtol=1e-5)

    # Case 2: multi-block grid with a ragged final block (m = 2880, tm = 1024).
    x2 = jax.random.normal(kx2, (3, 24, 40, IN_FEATURES), dtype=jnp.float32)
    out2 = jax.block_until_ready(
        linear_leaky(x2, w, NEGATIVE_SLOPE, tm=1024, min_rows_for_pallas=0))
    assert out2.shape == (3, 24, 40, OUT_FEATURES)
    assert jnp.allclose(out2, reference(x2, w, NEGATIVE_SLOPE),
                        atol=1e-5, rtol=1e-5)

    # Case 3: row count not a multiple of 16 -> channels-first Pallas kernel.
    x3 = jax.random.normal(kx3, (2, 5, 7, IN_FEATURES), dtype=jnp.float32)
    out3 = jax.block_until_ready(
        linear_leaky(x3, w, NEGATIVE_SLOPE, min_rows_for_pallas=0))
    assert out3.shape == (2, 5, 7, OUT_FEATURES)
    assert jnp.allclose(out3, reference(x3, w, NEGATIVE_SLOPE),
                        atol=1e-5, rtol=1e-5)

    print("KERNEL_OK")
</pallas_src>

<mosaic_0001>
module attributes {stable_mosaic.version = 11 : i64} {
  func.func @_interleaved_kernel(%arg0: i32, %arg1: memref<3x512xf32, #tpu.memory_space<vmem>>, %arg2: memref<8x3xf32, #tpu.memory_space<vmem>>, %arg3: memref<32x128xf32, #tpu.memory_space<vmem>>) attributes {dimension_semantics = [#tpu.dimension_semantics<parallel>], iteration_bounds = array<i64: 1>, scalar_prefetch = 0 : i64, scratch_operands = 0 : i64, tpu.core_type = #tpu.core_type<tc>, window_params = [{transform_indices = @transform_0, window_bounds = array<i64: 3, 512>}, {pipeline_mode = #tpu.pipeline_mode<synchronous>, transform_indices = @transform_1, window_bounds = array<i64: 8, 3>}, {transform_indices = @transform_2, window_bounds = array<i64: 32, 128>}]} {
    %c0 = arith.constant 0 : index
    %c0_0 = arith.constant 0 : index
    %0 = vector.load %arg1[%c0, %c0_0] : memref<3x512xf32, #tpu.memory_space<vmem>>, vector<3x512xf32>
    %c0_1 = arith.constant 0 : index
    %c0_2 = arith.constant 0 : index
    %1 = vector.load %arg2[%c0_1, %c0_2] : memref<8x3xf32, #tpu.memory_space<vmem>>, vector<8x3xf32>
    %2 = vector.extract_strided_slice %1 {offsets = [0, 0], sizes = [8, 1], strides = [1, 1]} : vector<8x3xf32> to vector<8x1xf32>
    %3 = vector.extract_strided_slice %0 {offsets = [0, 0], sizes = [1, 512], strides = [1, 1]} : vector<3x512xf32> to vector<1x512xf32>
    %4 = vector.broadcast %2 : vector<8x1xf32> to vector<8x512xf32>
    %5 = vector.broadcast %3 : vector<1x512xf32> to vector<8x512xf32>
    %6 = arith.mulf %4, %5 : vector<8x512xf32>
    %7 = vector.extract_strided_slice %1 {offsets = [0, 1], sizes = [8, 1], strides = [1, 1]} : vector<8x3xf32> to vector<8x1xf32>
    %8 = vector.extract_strided_slice %0 {offsets = [1, 0], sizes = [1, 512], strides = [1, 1]} : vector<3x512xf32> to vector<1x512xf32>
    %9 = vector.broadcast %7 : vector<8x1xf32> to vector<8x512xf32>
    %10 = vector.broadcast %8 : vector<1x512xf32> to vector<8x512xf32>
    %11 = arith.mulf %9, %10 : vector<8x512xf32>
    %12 = arith.addf %6, %11 : vector<8x512xf32>
    %13 = vector.extract_strided_slice %1 {offsets = [0, 2], sizes = [8, 1], strides = [1, 1]} : vector<8x3xf32> to vector<8x1xf32>
    %14 = vector.extract_strided_slice %0 {offsets = [2, 0], sizes = [1, 512], strides = [1, 1]} : vector<3x512xf32> to vector<1x512xf32>
    %15 = vector.broadcast %13 : vector<8x1xf32> to vector<8x512xf32>
    %16 = vector.broadcast %14 : vector<1x512xf32> to vector<8x512xf32>
    %17 = arith.mulf %15, %16 : vector<8x512xf32>
    %18 = arith.addf %12, %17 : vector<8x512xf32>
    %cst = arith.constant 0.000000e+00 : f32
    %19 = vector.broadcast %cst : f32 to vector<8x512xf32>
    %20 = arith.cmpf ogt, %18, %19 : vector<8x512xf32>
    %cst_3 = arith.constant -1.000000e+00 : f32
    %21 = vector.broadcast %cst_3 : f32 to vector<8x512xf32>
    %22 = arith.mulf %21, %18 : vector<8x512xf32>
    %23 = arith.select %20, %18, %22 : vector<8x512xi1>, vector<8x512xf32>
    %24 = tpu.transpose %23, [1, 0] : vector<8x512xf32> -> vector<512x8xf32>
    %25 = vector.shape_cast %24 : vector<512x8xf32> to vector<32x128xf32>
    %c0_4 = arith.constant 0 : index
    %c0_5 = arith.constant 0 : index
    %26 = vector.load %arg3[%c0_4, %c0_5] : memref<32x128xf32, #tpu.memory_space<vmem>>, vector<32x128xf32>
    tpu.vector_store %arg3[%c0_4, %c0_5], %25 {strides = array<i32>} : memref<32x128xf32, #tpu.memory_space<vmem>>, vector<32x128xf32>,
    return
  }
  func.func @transform_0(%arg0: i32) -> (i32, i32) {
    %c0_i32 = arith.constant 0 : i32
    %c0_i32_0 = arith.constant 0 : i32
    return %c0_i32, %arg0 : i32, i32
  }
  func.func @transform_1(%arg0: i32) -> (i32, i32) {
    %c0_i32 = arith.constant 0 : i32
    %c0_i32_0 = arith.constant 0 : i32
    %c0_i32_1 = arith.constant 0 : i32
    return %c0_i32, %c0_i32_0 : i32, i32
  }
  func.func @transform_2(%arg0: i32) -> (i32, i32) {
    %c0_i32 = arith.constant 0 : i32
    %c0_i32_0 = arith.constant 0 : i32
    return %arg0, %c0_i32 : i32, i32
  }
}

module attributes {stable_mosaic.version = 11 : i64} {
  func.func @_channels_first_kernel(%arg0: i32, %arg1: memref<3x512xf32, #tpu.memory_space<vmem>>, %arg2: memref<8x3xf32, #tpu.memory_space<vmem>>, %arg3: memref<8x512xf32, #tpu.memory_space<vmem>>) attributes {dimension_semantics = [#tpu.dimension_semantics<parallel>], iteration_bounds = array<i64: 1>, scalar_prefetch = 0 : i64, scratch_operands = 0 : i64, tpu.core_type = #tpu.core_type<tc>, window_params = [{transform_indices = @transform_0, window_bounds = array<i64: 3, 512>}, {pipeline_mode = #tpu.pipeline_mode<synchronous>, transform_indices = @transform_1, window_bounds = array<i64: 8, 3>}, {transform_indices = @transform_2, window_bounds = array<i64: 8, 512>}]} {
    %c0 = arith.constant 0 : index
    %c0_0 = arith.constant 0 : index
    %0 = vector.load %arg1[%c0, %c0_0] : memref<3x512xf32, #tpu.memory_space<vmem>>, vector<3x512xf32>
    %c0_1 = arith.constant 0 : index
    %c0_2 = arith.constant 0 : index
    %1 = vector.load %arg2[%c0_1, %c0_2] : memref<8x3xf32, #tpu.memory_space<vmem>>, vector<8x3xf32>
    %2 = vector.extract_strided_slice %1 {offsets = [0, 0], sizes = [8, 1], strides = [1, 1]} : vector<8x3xf32> to vector<8x1xf32>
    %3 = vector.extract_strided_slice %0 {offsets = [0, 0], sizes = [1, 512], strides = [1, 1]} : vector<3x512xf32> to vector<1x512xf32>
    %4 = vector.broadcast %2 : vector<8x1xf32> to vector<8x512xf32>
    %5 = vector.broadcast %3 : vector<1x512xf32> to vector<8x512xf32>
    %6 = arith.mulf %4, %5 : vector<8x512xf32>
    %7 = vector.extract_strided_slice %1 {offsets = [0, 1], sizes = [8, 1], strides = [1, 1]} : vector<8x3xf32> to vector<8x1xf32>
    %8 = vector.extract_strided_slice %0 {offsets = [1, 0], sizes = [1, 512], strides = [1, 1]} : vector<3x512xf32> to vector<1x512xf32>
    %9 = vector.broadcast %7 : vector<8x1xf32> to vector<8x512xf32>
    %10 = vector.broadcast %8 : vector<1x512xf32> to vector<8x512xf32>
    %11 = arith.mulf %9, %10 : vector<8x512xf32>
    %12 = arith.addf %6, %11 : vector<8x512xf32>
    %13 = vector.extract_strided_slice %1 {offsets = [0, 2], sizes = [8, 1], strides = [1, 1]} : vector<8x3xf32> to vector<8x1xf32>
    %14 = vector.extract_strided_slice %0 {offsets = [2, 0], sizes = [1, 512], strides = [1, 1]} : vector<3x512xf32> to vector<1x512xf32>
    %15 = vector.broadcast %13 : vector<8x1xf32> to vector<8x512xf32>
    %16 = vector.broadcast %14 : vector<1x512xf32> to vector<8x512xf32>
    %17 = arith.mulf %15, %16 : vector<8x512xf32>
    %18 = arith.addf %12, %17 : vector<8x512xf32>
    %cst = arith.constant 0.000000e+00 : f32
    %19 = vector.broadcast %cst : f32 to vector<8x512xf32>
    %20 = arith.cmpf ogt, %18, %19 : vector<8x512xf32>
    %cst_3 = arith.constant -1.000000e+00 : f32
    %21 = vector.broadcast %cst_3 : f32 to vector<8x512xf32>
    %22 = arith.mulf %21, %18 : vector<8x512xf32>
    %23 = arith.select %20, %18, %22 : vector<8x512xi1>, vector<8x512xf32>
    %c0_4 = arith.constant 0 : index
    %c0_5 = arith.constant 0 : index
    %24 = vector.load %arg3[%c0_4, %c0_5] : memref<8x512xf32, #tpu.memory_space<vmem>>, vector<8x512xf32>
    tpu.vector_store %arg3[%c0_4, %c0_5], %23 {strides = array<i32>} : memref<8x512xf32, #tpu.memory_space<vmem>>, vector<8x512xf32>,
    return
  }
  func.func @transform_0(%arg0: i32) -> (i32, i32) {
    %c0_i32 = arith.constant 0 : i32
    %c0_i32_0 = arith.constant 0 : i32
    return %c0_i32, %arg0 : i32, i32
  }
  func.func @transform_1(%arg0: i32) -> (i32, i32) {
    %c0_i32 = arith.constant 0 : i32
    %c0_i32_0 = arith.constant 0 : i32
    %c0_i32_1 = arith.constant 0 : i32
    return %c0_i32, %c0_i32_0 : i32, i32
  }
  func.func @transform_2(%arg0: i32) -> (i32, i32) {
    %c0_i32 = arith.constant 0 : i32
    %c0_i32_0 = arith.constant 0 : i32
    return %c0_i32, %arg0 : i32, i32
  }
}

</mosaic_0001>

<bundles_post_ra>
// kernel: tpu_custom_call.1
= control target key start
LH: loop header
LB: loop body
LE: loop exit
PB: predicated region body
PF: predicated region fallthrough
CT: control target
= control target key end

     0   :  { %7 = vsyncpa [#allocation3], 0  ;;  %s305_s0 = inlined_call_operand.hbm [shape: f32[3,512], index: 0, kind: input, shape index: {}]   ;;  %s306_s1 = inlined_call_operand.vmem [shape: f32[8,3], index: 1, kind: input, shape index: {}]   ;;  %s307_s2 = inlined_call_operand.hbm [shape: f32[8,512], index: 2, kind: output, shape index: {}]  }
   0x1   :  { %8 = vsyncpa [#allocation4], 0  ;;  %s258_s9 = smov [#allocation2]   ;;  %s210_s13 = scalar_lea.hbm %s305_s0, 256 }
   0x2   :  { %s15_s10 = sshll.u32 %s258_s9, 4  ;;  %p211_p0 = scmp.ne.s32.totalorder %s305_s0, %s210_s13  ;;  %s16_s10 = int_to_ptr.vmem [resolvable:$true] %s15_s10 }
   0x3   :  { %p214_p1 = scmp.lt.u32.totalorder %s210_s13, %s305_s0 }
   0x5   :  { %p216_p2 = pnand %p214_p1, %p211_p0 }
   0x7   :  { %219 = shalt.err (!%p216_p2)
}
   0x8   :  { %s220_s18 = scalar_lea.vmem %s16_s10, 256  ;;  %p225_p4 = scmp.lt.s32.totalorder %s16_s10, %s16_s10 }
   0x9   :  { %p221_p3 = scmp.ne.s32.totalorder %s16_s10, %s220_s18  ;;  %p226_p5 = scmp.lt.s32.totalorder %s220_s18, %s220_s18 }
   0xb   :  { %p227_p6 = por %p226_p5, %p225_p4 }
   0xd   :  { %p228_p7 = pnand %p227_p6, %p221_p3 }
   0xf   :  { %231 = shalt.err (!%p228_p7)
}
  0x10   :  { %18 = dma.hbm_to_vmem [thread:$0]  %s305_s0, 256, %s16_s10, [#allocation3]  }
  0x11   :  { %254 = dma.done.wait [#allocation3], 256  }
  0x12   :  { %255 = vsyncadd [#allocation3], 4294967040  ;;  %v259_v0 = vmov 0   ;;  %v260_v1 = vmov 2   ;;  %v26_v2 = vld [vmem:[%s306_s1] sm:$0xff]  ;;  %v261_v3 = vmov 1   ;;  %v34_v4 = vlaneseq }
  0x13   :  { %206 = vset.pattern.permute.xlu0 %v259_v0  ;;  %208 = vset.pattern.permute.xlu1 %v260_v1  ;;  %v24_v8 = vld [vmem:[#allocation2] sm:$0x77]  ;;  %v25_v9 = vld [vmem:[#allocation2 + $0x8] sm:$0x77]  ;;  %s262_s0 = smov [#allocation5]  }
  0x14   :  { %29 = vperm.xlu0 %206, %v26_v2   ;;  %123 = vperm.xlu1 %208, %v26_v2   ;;  %v35_v5 = vshrl.u32 %v34_v4, 7  ;;  %s192_s1 = sshll.u32 %s262_s0, 4  ;;  %s193_s1 = int_to_ptr.vmem [resolvable:$true] %s192_s1 }
  0x15   :  { %s232_s23 = scalar_lea.vmem %s193_s1, 512  ;;  %p237_p9 = scmp.lt.s32.totalorder %s193_s1, %s193_s1 }
  0x16   :  { %v36_v6 = vsub.s32 0, %v35_v5  ;;  %v40_v7 = vsub.s32 4, %v35_v5  ;;  %v128_v10 = vsub.s32 2, %v35_v5  ;;  %v132_v11 = vsub.s32 6, %v35_v5  ;;  %p233_p8 = scmp.ne.s32.totalorder %s193_s1, %s232_s23  ;;  %p238_p10 = scmp.lt.s32.totalorder %s232_s23, %s232_s23 }
  0x17   :  { %v80_v12 = vsub.s32 1, %v35_v5  ;;  %v84_v13 = vsub.s32 5, %v35_v5 }
  0x18   :  { %207 = vset.pattern.permute.xlu0 %v261_v3  ;;  %v37_v14 = vrot.slane %v24_v8, %v36_v6  ;;  %v41_v15 = vrot.slane %v24_v8, %v40_v7  ;;  %v45_v16 = vrot.slane %v25_v9, %v36_v6  ;;  %v49_v17 = vrot.slane %v25_v9, %v40_v7  ;;  %p239_p11 = por %p238_p10, %p237_p9 }
  0x19   :  { %75 = vperm.xlu0 %207, %v26_v2   ;;  %v129_v18 = vrot.slane %v24_v8, %v128_v10  ;;  %v133_v19 = vrot.slane %v24_v8, %v132_v11  ;;  %v137_v20 = vrot.slane %v25_v9, %v128_v10  ;;  %v141_v21 = vrot.slane %v25_v9, %v132_v11 }
  0x1a   :  { %v81_v22 = vrot.slane %v24_v8, %v80_v12  ;;  %v85_v23 = vrot.slane %v24_v8, %v84_v13  ;;  %v89_v24 = vrot.slane %v25_v9, %v80_v12  ;;  %v93_v25 = vrot.slane %v25_v9, %v84_v13  ;;  %p240_p12 = pnand %p239_p11, %p233_p8 }
  0x1b   :  { %v57_v27 = vrot.slane %v37_v14, %v36_v6  ;;  %v61_v28 = vrot.slane %v41_v15, %v36_v6  ;;  %v65_v29 = vrot.slane %v45_v16, %v36_v6  ;;  %v69_v30 = vrot.slane %v49_v17, %v36_v6 }
  0x1c   :  { %v149_v31 = vrot.slane %v129_v18, %v128_v10  ;;  %v153_v32 = vrot.slane %v133_v19, %v128_v10  ;;  %v157_v33 = vrot.slane %v137_v20, %v128_v10  ;;  %v161_v34 = vrot.slane %v141_v21, %v128_v10 }
  0x1d   :  { %209 = vset.pattern.permute.xlu0 %v260_v1  ;;  %v101_v35 = vrot.slane %v81_v22, %v80_v12  ;;  %v105_v36 = vrot.slane %v85_v23, %v80_v12  ;;  %v109_v37 = vrot.slane %v89_v24, %v80_v12  ;;  %v113_v38 = vrot.slane %v93_v25, %v80_v12 }
  0x93   :  { %v30_v26 = vpop.permute.xlu0 %29  ;;  %v124_v39 = vpop.permute.xlu1 %123 }
  0x94   :  { %v70_v40 = vmul.f32 %v57_v27, %v30_v26  ;;  %v71_v41 = vmul.f32 %v61_v28, %v30_v26  ;;  %v72_v42 = vmul.f32 %v65_v29, %v30_v26  ;;  %v73_v43 = vmul.f32 %v69_v30, %v30_v26 }
  0x95   :  { %v162_v45 = vmul.f32 %v149_v31, %v124_v39  ;;  %v163_v46 = vmul.f32 %v153_v32, %v124_v39  ;;  %v164_v47 = vmul.f32 %v157_v33, %v124_v39  ;;  %v165_v48 = vmul.f32 %v161_v34, %v124_v39 }
  0x98   :  { %v76_v44 = vpop.permute.xlu0 %75 }
  0x99   :  { %v114_v49 = vmul.f32 %v101_v35, %v76_v44  ;;  %v115_v50 = vmul.f32 %v105_v36, %v76_v44  ;;  %v116_v51 = vmul.f32 %v109_v37, %v76_v44  ;;  %v117_v52 = vmul.f32 %v113_v38, %v76_v44 }
  0x9b   :  { %v118_v53 = vadd.f32 %v114_v49, %v70_v40  ;;  %v119_v54 = vadd.f32 %v115_v50, %v71_v41  ;;  %v120_v55 = vadd.f32 %v116_v51, %v72_v42  ;;  %v121_v56 = vadd.f32 %v117_v52, %v73_v43 }
  0x9d   :  { %v166_v57 = vadd.f32 %v162_v45, %v118_v53  ;;  %v167_v58 = vadd.f32 %v163_v46, %v119_v54  ;;  %v168_v59 = vadd.f32 %v164_v47, %v120_v55  ;;  %v169_v60 = vadd.f32 %v165_v48, %v121_v56 }
  0x9f   :  { %vm170_vm0 = vcmp.gt.f32.partialorder %v166_v57, 0.0  ;;  %vm171_vm1 = vcmp.gt.f32.partialorder %v167_v58, 0.0  ;;  %vm172_vm2 = vcmp.gt.f32.partialorder %v168_v59, 0.0  ;;  %vm173_vm3 = vcmp.gt.f32.partialorder %v169_v60, 0.0 }
  0xa0   :  { %v174_v61 = vmul.f32 -1.0, %v166_v57  ;;  %v175_v62 = vmul.f32 -1.0, %v167_v58  ;;  %v176_v63 = vmul.f32 -1.0, %v168_v59  ;;  %v177_v0 = vmul.f32 -1.0, %v169_v60 }
  0xa2   :  { %v178_v1 = vsel %vm170_vm0, %v166_v57, %v174_v61  ;;  %v179_v2 = vsel %vm171_vm1, %v167_v58, %v175_v62  ;;  %v180_v3 = vsel %vm172_vm2, %v168_v59, %v176_v63  ;;  %v181_v4 = vsel %vm173_vm3, %v169_v60, %v177_v0 }
  0xa3   :  { %182 = vst [vmem:[#allocation5] sm:$0xff] %v178_v1  ;;  %183 = vst [vmem:[#allocation5 + $0x8] sm:$0xff] %v179_v2 }
  0xa4   :  { %184 = vst [vmem:[#allocation5 + $0x10] sm:$0xff] %v180_v3  ;;  %185 = vst [vmem:[#allocation5 + $0x18] sm:$0xff] %v181_v4 }
  0xa5   :  { %243 = shalt.err (!%p240_p12)
}
  0xa6   :  { %s244_s26 = scalar_lea.hbm %s307_s2, 512 }
  0xa7   :  { %p245_p13 = scmp.ne.s32.totalorder %s307_s2, %s244_s26  ;;  %p248_p0 = scmp.lt.u32.totalorder %s244_s26, %s307_s2 }
  0xa9   :  { %p250_p1 = pnand %p248_p0, %p245_p13 }
  0xab   :  { %253 = shalt.err (!%p250_p1)
}
  0xac   :  { %195 = dma.vmem_to_hbm [thread:$0]  %s193_s1, 512, %s307_s2, [#allocation4]  }
  0xad   :  { %256 = dma.done.wait [#allocation4], 512  }
  0xae   :  { %257 = vsyncadd [#allocation4], 4294966784 }
  0xaf   :  { %199 = vsyncpa [#allocation3], 1 }
  0xb0   :  { %200 = vsyncpa [#allocation4], 1 }

</bundles_post_ra>
